<compile_context>
chip_gen: v7x
topology: tpu7x:2x2x1
jax: 0.10.0
libtpu: 0.0.40
codegen_flags: <defaults>
</compile_context>

<pallas_src>
import functools

import jax
import jax.numpy as jnp
from jax import lax
from jax.experimental import pallas as pl
from jax.experimental.pallas import tpu as pltpu

# Module hyper-parameters from the PyTorch script.
INPUT_DIM = 50
HIDDEN_DIM = 200
OUTPUT_DIM = 2
POINCARE_OUTPUT = True

LANE = 128  # TPU lane width (used only to pad the hidden dim of the weights).


def _round_up(n, m):
    return ((n + m - 1) // m) * m


def _log0_poincare(x):
    """Poincare-ball (curvature c=1) logarithmic map at the origin, row-wise.

    log0(x) = artanh(||x||) * x / ||x||

    EUP-friendly formulation: rsqrt instead of sqrt+divide, and
    artanh(z) = 0.5 * (log(1+z) - log(1-z))  -- no VALU divides.  The clamps
    also guarantee no NaN/Inf on garbage rows of a partial last block.
    """
    # TODO(synk): log0_poincare body is not shown in the snippet; this is the
    # standard c=1 Poincare-ball log map at the origin used in the BDP repo.
    sq = jnp.sum(x * x, axis=-1, keepdims=True)
    inv_norm = lax.rsqrt(jnp.maximum(sq, 1e-15))      # 1 / clamped ||x||
    norm = sq * inv_norm                              # clamped ||x||
    z = jnp.minimum(norm, 1.0 - 1e-5)                 # keep artanh finite
    artanh = 0.5 * (jnp.log(1.0 + z) - jnp.log(1.0 - z))
    return (artanh * inv_norm) * x


def decoder_kernel(x_ref, w1_ref, b1_ref, w2_ref, b2_ref, o_ref,
                   *, poincare_output):
    # x may be streamed in bf16; the Poincare map always runs in f32.
    x = x_ref[...].astype(jnp.float32)                        # (TN, D)
    if poincare_output:
        x = _log0_poincare(x)

    # fc1 + ReLU. Weights are used at their stored dtype (no per-step upcast);
    # if they are bf16 the matmul runs natively in bf16 with f32 accumulation.
    w1 = w1_ref[...]                                          # (D, H)
    if w1.dtype != jnp.float32:
        x = x.astype(w1.dtype)
    h = jnp.dot(x, w1, preferred_element_type=jnp.float32)
    h = jnp.maximum(h + b1_ref[...], 0.0)                     # (TN, H)

    # fc2 -- true output width (masked vst is trivial next to HBM saved).
    w2 = w2_ref[...]                                          # (H, O)
    if w2.dtype != jnp.float32:
        h = h.astype(w2.dtype)
    y = jnp.dot(h, w2, preferred_element_type=jnp.float32)
    o_ref[...] = (y + b2_ref[...]).astype(o_ref.dtype)        # (TN, O)


def decoder_forward(x, w1, b1, w2, b2, *, poincare_output=True,
                    block_n=4096, stream_dtype=None, matmul_dtype=None,
                    pad_hidden=True):
    """x: (N, D) f32; w1: (D, H); b1: (1, H); w2: (H, O); b2: (1, O).

    Returns (N, O) float32.
      stream_dtype=jnp.bfloat16  -> stream x at half HBM traffic (math f32)
      matmul_dtype=jnp.bfloat16  -> run both matmuls natively in bf16 with
                                    f32 accumulation (v5e MXU-friendly)
    """
    N, D = x.shape
    H = w1.shape[1]
    O = w2.shape[1]

    # Lane-dense hidden dim: pad H -> multiple of 128 with zeros.  The weights
    # are tiny and resident, and zero columns/rows are a no-op through ReLU
    # and the second matmul.
    if pad_hidden:
        h_pad = _round_up(H, LANE)
        if h_pad != H:
            w1 = jnp.pad(w1, ((0, 0), (0, h_pad - H)))
            b1 = jnp.pad(b1, ((0, 0), (0, h_pad - H)))
            w2 = jnp.pad(w2, ((0, h_pad - H), (0, 0)))
            H = h_pad

    # Low-precision streaming applies to x only; W1/W2 are DMA'd once (constant
    # index_map) so casting them saves no HBM and would only add per-step work.
    if stream_dtype is not None:
        x = x.astype(stream_dtype)
    if matmul_dtype is not None:
        w1 = w1.astype(matmul_dtype)
        w2 = w2.astype(matmul_dtype)
    b1 = b1.astype(jnp.float32)
    b2 = b2.astype(jnp.float32)

    # Batch tiling.  Rows per tile are a multiple of 16 when x is packed
    # (bf16) else 8.  Clamp the tile so the grid has >= 2 steps whenever the
    # batch allows it (both v7x TensorCores), and never larger than needed.
    # No wrapper-side padding of x and no output row slice: Pallas handles the
    # partial last block (OOB reads are don't-care; OOB writes are dropped).
    row_mult = 16 if (stream_dtype is not None and
                      jnp.dtype(stream_dtype).itemsize < 4) else 8
    block_n = max(row_mult, min(block_n, _round_up(pl.cdiv(N, 2), row_mult)))
    nb = pl.cdiv(N, block_n)

    kernel = functools.partial(decoder_kernel, poincare_output=poincare_output)
    out = pl.pallas_call(
        kernel,
        out_shape=jax.ShapeDtypeStruct((N, O), jnp.float32),
        grid=(nb,),
        in_specs=[
            pl.BlockSpec((block_n, D), lambda i: (i, 0)),   # x (streamed)
            pl.BlockSpec((D, H), lambda i: (0, 0)),          # W1 (resident)
            pl.BlockSpec((1, H), lambda i: (0, 0)),          # b1
            pl.BlockSpec((H, O), lambda i: (0, 0)),          # W2 (resident)
            pl.BlockSpec((1, O), lambda i: (0, 0)),          # b2
        ],
        out_specs=pl.BlockSpec((block_n, O), lambda i: (i, 0)),
        compiler_params=pltpu.CompilerParams(
            dimension_semantics=("parallel",)),
    )(x, w1, b1, w2, b2)
    return out


def _init_linear(key, fan_in, fan_out):
    """torch.nn.Linear-style init: U(-k, k), k=1/sqrt(fan_in).

    Weight returned pre-transposed to (fan_in, fan_out); bias (1, fan_out).
    """
    kw, kb = jax.random.split(key)
    bound = 1.0 / jnp.sqrt(jnp.float32(fan_in))
    w = jax.random.uniform(kw, (fan_in, fan_out), jnp.float32, -bound, bound)
    b = jax.random.uniform(kb, (1, fan_out), jnp.float32, -bound, bound)
    return w, b


def _reference_forward(x, w1, b1, w2, b2, poincare_output):
    if poincare_output:
        x = _log0_poincare(x)
    h = jnp.maximum(x @ w1 + b1, 0.0)
    return h @ w2 + b2


if __name__ == "__main__":
    key = jax.random.PRNGKey(0)
    kx, k1, k2 = jax.random.split(key, 3)

    w1, b1 = _init_linear(k1, INPUT_DIM, HIDDEN_DIM)
    w2, b2 = _init_linear(k2, HIDDEN_DIM, OUTPUT_DIM)

    # --- test 1: f32 path, batch that splits into a 2-step parallel grid ---
    N = 128
    x = jax.random.uniform(kx, (N, INPUT_DIM), jnp.float32, -0.1, 0.1)
    out = jax.block_until_ready(
        decoder_forward(x, w1, b1, w2, b2, poincare_output=POINCARE_OUTPUT))
    ref = _reference_forward(x, w1, b1, w2, b2, POINCARE_OUTPUT)
    assert out.shape == (N, OUTPUT_DIM)
    assert jnp.allclose(out, ref, atol=5e-4, rtol=5e-4), "f32 mismatch vs reference"

    # --- test 2: ragged batch (partial last block, no wrapper padding) ---
    N2 = 37
    x2 = jax.random.uniform(kx, (N2, INPUT_DIM), jnp.float32, -0.1, 0.1)
    out2 = jax.block_until_ready(
        decoder_forward(x2, w1, b1, w2, b2, poincare_output=POINCARE_OUTPUT))
    ref2 = _reference_forward(x2, w1, b1, w2, b2, POINCARE_OUTPUT)
    assert out2.shape == (N2, OUTPUT_DIM)
    assert jnp.allclose(out2, ref2, atol=5e-4, rtol=5e-4), "ragged mismatch"

    # --- test 3: bf16 streaming of x + native bf16 matmuls (v5e-friendly) ---
    out3 = jax.block_until_ready(
        decoder_forward(x, w1, b1, w2, b2, poincare_output=POINCARE_OUTPUT,
                        stream_dtype=jnp.bfloat16, matmul_dtype=jnp.bfloat16))
    assert out3.shape == (N, OUTPUT_DIM)
    assert jnp.allclose(out3, ref, atol=5e-2, rtol=5e-2), "bf16 mismatch"

    print("KERNEL_OK")
</pallas_src>

<mosaic_0001>
module attributes {stable_mosaic.version = 11 : i64} {
  func.func @decoder_kernel(%arg0: i32, %arg1: memref<64x50xf32, #tpu.memory_space<vmem>>, %arg2: memref<50x256xf32, #tpu.memory_space<vmem>>, %arg3: memref<1x256xf32, #tpu.memory_space<vmem>>, %arg4: memref<256x2xf32, #tpu.memory_space<vmem>>, %arg5: memref<1x2xf32, #tpu.memory_space<vmem>>, %arg6: memref<64x2xf32, #tpu.memory_space<vmem>>) attributes {dimension_semantics = [#tpu.dimension_semantics<parallel>], iteration_bounds = array<i64: 2>, scalar_prefetch = 0 : i64, scratch_operands = 0 : i64, tpu.core_type = #tpu.core_type<tc>, window_params = [{transform_indices = @transform_0, window_bounds = array<i64: 64, 50>}, {pipeline_mode = #tpu.pipeline_mode<synchronous>, transform_indices = @transform_1, window_bounds = array<i64: 50, 256>}, {pipeline_mode = #tpu.pipeline_mode<synchronous>, transform_indices = @transform_2, window_bounds = array<i64: 1, 256>}, {pipeline_mode = #tpu.pipeline_mode<synchronous>, transform_indices = @transform_3, window_bounds = array<i64: 256, 2>}, {pipeline_mode = #tpu.pipeline_mode<synchronous>, transform_indices = @transform_4, window_bounds = array<i64: 1, 2>}, {transform_indices = @transform_5, window_bounds = array<i64: 64, 2>}]} {
    %c0 = arith.constant 0 : index
    %c0_0 = arith.constant 0 : index
    %0 = vector.load %arg1[%c0, %c0_0] : memref<64x50xf32, #tpu.memory_space<vmem>>, vector<64x50xf32>
    %1 = arith.mulf %0, %0 : vector<64x50xf32>
    %cst = arith.constant dense<0.000000e+00> : vector<64xf32>
    %2 = vector.multi_reduction <add>, %1, %cst [1] : vector<64x50xf32> to vector<64xf32>
    %3 = vector.shape_cast %2 : vector<64xf32> to vector<64x1xf32>
    %cst_1 = arith.constant 1.000000e-15 : f32
    %4 = vector.broadcast %cst_1 : f32 to vector<64x1xf32>
    %5 = arith.maximumf %3, %4 : vector<64x1xf32>
    %6 = math.rsqrt %5 : vector<64x1xf32>
    %7 = arith.mulf %3, %6 : vector<64x1xf32>
    %cst_2 = arith.constant 0.999989986 : f32
    %8 = vector.broadcast %cst_2 : f32 to vector<64x1xf32>
    %9 = arith.minimumf %7, %8 : vector<64x1xf32>
    %cst_3 = arith.constant 1.000000e+00 : f32
    %10 = vector.broadcast %cst_3 : f32 to vector<64x1xf32>
    %11 = arith.addf %10, %9 : vector<64x1xf32>
    %12 = math.log %11 : vector<64x1xf32>
    %cst_4 = arith.constant 1.000000e+00 : f32
    %13 = vector.broadcast %cst_4 : f32 to vector<64x1xf32>
    %14 = arith.subf %13, %9 : vector<64x1xf32>
    %15 = math.log %14 : vector<64x1xf32>
    %16 = arith.subf %12, %15 : vector<64x1xf32>
    %cst_5 = arith.constant 5.000000e-01 : f32
    %17 = vector.broadcast %cst_5 : f32 to vector<64x1xf32>
    %18 = arith.mulf %17, %16 : vector<64x1xf32>
    %19 = arith.mulf %18, %6 : vector<64x1xf32>
    %20 = vector.broadcast %19 : vector<64x1xf32> to vector<64x50xf32>
    %21 = arith.mulf %20, %0 : vector<64x50xf32>
    %c0_6 = arith.constant 0 : index
    %c0_7 = arith.constant 0 : index
    %22 = vector.load %arg2[%c0_6, %c0_7] : memref<50x256xf32, #tpu.memory_space<vmem>>, vector<50x256xf32>
    %cst_8 = arith.constant dense<0.000000e+00> : vector<64x256xf32>
    %23 = tpu.matmul %21, %22, %cst_8 {dimension_numbers = #tpu.dot_dimension_numbers<[1], [0], [0], [1], [0, 0, 1, 1], [], []>} : vector<64x50xf32>, vector<50x256xf32>, vector<64x256xf32> -> vector<64x256xf32>
    %c0_9 = arith.constant 0 : index
    %c0_10 = arith.constant 0 : index
    %24 = vector.load %arg3[%c0_9, %c0_10] : memref<1x256xf32, #tpu.memory_space<vmem>>, vector<1x256xf32>
    %25 = vector.broadcast %24 : vector<1x256xf32> to vector<64x256xf32>
    %26 = arith.addf %23, %25 : vector<64x256xf32>
    %cst_11 = arith.constant 0.000000e+00 : f32
    %27 = vector.broadcast %cst_11 : f32 to vector<64x256xf32>
    %28 = arith.maximumf %26, %27 : vector<64x256xf32>
    %c0_12 = arith.constant 0 : index
    %c0_13 = arith.constant 0 : index
    %29 = vector.load %arg4[%c0_12, %c0_13] : memref<256x2xf32, #tpu.memory_space<vmem>>, vector<256x2xf32>
    %cst_14 = arith.constant dense<0.000000e+00> : vector<64x2xf32>
    %30 = tpu.matmul %28, %29, %cst_14 {dimension_numbers = #tpu.dot_dimension_numbers<[1], [0], [0], [1], [0, 0, 1, 1], [], []>} : vector<64x256xf32>, vector<256x2xf32>, vector<64x2xf32> -> vector<64x2xf32>
    %c0_15 = arith.constant 0 : index
    %c0_16 = arith.constant 0 : index
    %31 = vector.load %arg5[%c0_15, %c0_16] : memref<1x2xf32, #tpu.memory_space<vmem>>, vector<1x2xf32>
    %32 = vector.broadcast %31 : vector<1x2xf32> to vector<64x2xf32>
    %33 = arith.addf %30, %32 : vector<64x2xf32>
    %c0_17 = arith.constant 0 : index
    %c0_18 = arith.constant 0 : index
    %34 = vector.load %arg6[%c0_17, %c0_18] : memref<64x2xf32, #tpu.memory_space<vmem>>, vector<64x2xf32>
    tpu.vector_store %arg6[%c0_17, %c0_18], %33 {strides = array<i32>} : memref<64x2xf32, #tpu.memory_space<vmem>>, vector<64x2xf32>,
    return
  }
  func.func @transform_0(%arg0: i32) -> (i32, i32) {
    %c0_i32 = arith.constant 0 : i32
    %c0_i32_0 = arith.constant 0 : i32
    return %arg0, %c0_i32 : i32, i32
  }
  func.func @transform_1(%arg0: i32) -> (i32, i32) {
    %c0_i32 = arith.constant 0 : i32
    %c0_i32_0 = arith.constant 0 : i32
    %c0_i32_1 = arith.constant 0 : i32
    return %c0_i32, %c0_i32_0 : i32, i32
  }
  func.func @transform_2(%arg0: i32) -> (i32, i32) {
    %c0_i32 = arith.constant 0 : i32
    %c0_i32_0 = arith.constant 0 : i32
    %c0_i32_1 = arith.constant 0 : i32
    return %c0_i32, %c0_i32_0 : i32, i32
  }
  func.func @transform_3(%arg0: i32) -> (i32, i32) {
    %c0_i32 = arith.constant 0 : i32
    %c0_i32_0 = arith.constant 0 : i32
    %c0_i32_1 = arith.constant 0 : i32
    return %c0_i32, %c0_i32_0 : i32, i32
  }
  func.func @transform_4(%arg0: i32) -> (i32, i32) {
    %c0_i32 = arith.constant 0 : i32
    %c0_i32_0 = arith.constant 0 : i32
    %c0_i32_1 = arith.constant 0 : i32
    return %c0_i32, %c0_i32_0 : i32, i32
  }
  func.func @transform_5(%arg0: i32) -> (i32, i32) {
    %c0_i32 = arith.constant 0 : i32
    %c0_i32_0 = arith.constant 0 : i32
    return %arg0, %c0_i32 : i32, i32
  }
}

</mosaic_0001>

<bundles_post_ra>
// kernel: tpu_custom_call.1
= control target key start
LH: loop header
LB: loop body
LE: loop exit
PB: predicated region body
PF: predicated region fallthrough
CT: control target
= control target key end

     0   :  { %s1010_s18 = smov 0   ;;  %s1340_s0 = inlined_call_operand.vmem [shape: f32[128,50], index: 0, kind: input, shape index: {}]   ;;  %s1341_s1 = inlined_call_operand.vmem [shape: f32[50,256], index: 1, kind: input, shape index: {}]   ;;  %s1342_s2 = inlined_call_operand.vmem [shape: f32[1,256], index: 2, kind: input, shape index: {}]   ;;  %s1343_s3 = inlined_call_operand.vmem [shape: f32[256,2], index: 3, kind: input, shape index: {}]   ;;  %s1344_s4 = inlined_call_operand.vmem [shape: f32[1,2], index: 4, kind: input, shape index: {}]   ;;  %s1345_s5 = inlined_call_operand.vmem [shape: f32[128,2], index: 5, kind: output, shape index: {}]  }
   0x1 LB: > { %s776_s19 = sadd.s32 4294967295, %s977_s18   ;;  %p780_p0 = scmp.ge.s32.totalorder %s977_s18, 1  ;;  %s977_s18 = sphi %s1010_s18, %s15_s18  }
   0x2   : > { %p188_p1 = scmp.lt.s32.totalorder %s977_s18, 3 }
   0x4   : > { %p189_p2 = pnand %p780_p0, %p188_p1 }
   0x5   : > { %s781_s20 = sshll.u32 (!%p189_p2), %s776_s19, 3  ;;  %vm244_vm0 = vcmask (!%p189_p2), 408576   ;;  %v382_v24 = vld [vmem:[%s1341_s1 + $0x8] sm:$0xff] (!%p189_p2)  ;;  %v384_v25 = vld [vmem:[%s1341_s1 + $0x18] sm:$0xff] (!%p189_p2)  ;;  %v381_v27 = vld [vmem:[%s1341_s1] sm:$0xff] (!%p189_p2)  ;;  %vm431_vm1 = vcmask (!%p189_p2), 1041408  }
   0x6   : > { %192 = sbr.rel (%p189_p2) target bundleno = 669 (0x29d), region = 40  ;;  %p217_p3 = scmp.lt.s32.totalorder (!%p189_p2), %s781_s20, 15  ;;  %v854_v26 = vpack.c.bf16 (!%p189_p2), %v384_v25, %v382_v24  ;;  %v383_v28 = vld [vmem:[%s1341_s1 + $0x10] sm:$0xff] (!%p189_p2)  ;;  %v386_v30 = vld [vmem:[%s1341_s1 + $0x28] sm:$0xff] (!%p189_p2)  ;;  %v388_v31 = vld [vmem:[%s1341_s1 + $0x38] sm:$0xff] (!%p189_p2)  ;;  %v979_v44 = vmov (!%p189_p2), 0.0  }
   0x7   : > { %v856_v29 = vpack.c.bf16 (!%p189_p2), %v383_v28, %v381_v27  ;;  %v858_v32 = vpack.c.bf16 (!%p189_p2), %v388_v31, %v386_v30  ;;  %v385_v33 = vld [vmem:[%s1341_s1 + $0x20] sm:$0xff] (!%p189_p2)  ;;  %v387_v34 = vld [vmem:[%s1341_s1 + $0x30] sm:$0xff] (!%p189_p2)  ;;  %v390_v36 = vld [vmem:[%s1341_s1 + $0x48] sm:$0xff] (!%p189_p2)  ;;  %502 = vmatprep.mubr.f32.mxu0 (!%p189_p2), %v979_v44  ;;  %vm711_vm2 = vcmask (!%p189_p2), 15360  }
   0x8   : > { %855 = vmatprep.subr.bf16.mxu0 (!%p189_p2), %v854_v26  ;;  %v860_v35 = vpack.c.bf16 (!%p189_p2), %v387_v34, %v385_v33  ;;  %v392_v37 = vld [vmem:[%s1341_s1 + $0x58] sm:$0xff] (!%p189_p2)  ;;  %v389_v39 = vld [vmem:[%s1341_s1 + $0x40] sm:$0xff] (!%p189_p2)  ;;  %v391_v40 = vld [vmem:[%s1341_s1 + $0x50] sm:$0xff] (!%p189_p2) }
   0x9   : > { %857 = vmatpush1.bf16.msra.mxu0 (!%p189_p2), %v856_v29  ;;  %v862_v38 = vpack.c.bf16 (!%p189_p2), %v392_v37, %v390_v36  ;;  %v864_v41 = vpack.c.bf16 (!%p189_p2), %v391_v40, %v389_v39  ;;  %v394_v42 = vld [vmem:[%s1341_s1 + $0x68] sm:$0x3] (!%p189_p2)  ;;  %v393_v43 = vld [vmem:[%s1341_s1 + $0x60] sm:$0x3] (!%p189_p2)  ;;  %v585_v50 = vld [vmem:[%s1343_s3 + $0x90] sm:$0xff] (!%p189_p2) }
   0xa   : > { %859 = vmatprep.subr.bf16.mxu0 (!%p189_p2), %v858_v32  ;;  %v583_v45 = vld [vmem:[%s1343_s3 + $0x80] sm:$0xff] (!%p189_p2)  ;;  %v584_v46 = vld [vmem:[%s1343_s3 + $0x88] sm:$0xff] (!%p189_p2)  ;;  %v586_v51 = vld [vmem:[%s1343_s3 + $0x98] sm:$0xff] (!%p189_p2) }
   0xb   : > { %v567_v47 = vld [vmem:[%s1343_s3] sm:$0xff] (!%p189_p2)  ;;  %v866_v48 = vpack.c.bf16 (!%p189_p2), %v584_v46, %v583_v45  ;;  %v568_v49 = vld [vmem:[%s1343_s3 + $0x8] sm:$0xff] (!%p189_p2)  ;;  %v1129_v53 = vpack.c.bf16 (!%p189_p2), %v586_v51, %v585_v50  ;;  %v569_v54 = vld [vmem:[%s1343_s3 + $0x10] sm:$0xff] (!%p189_p2) }
   0xc   : > { %v1127_v52 = vpack.c.bf16 (!%p189_p2), %v568_v49, %v567_v47  ;;  %v570_v55 = vld [vmem:[%s1343_s3 + $0x18] sm:$0xff] (!%p189_p2)  ;;  %v587_v56 = vld [vmem:[%s1343_s3 + $0xa0] sm:$0xff] (!%p189_p2)  ;;  %v588_v57 = vld [vmem:[%s1343_s3 + $0xa8] sm:$0xff] (!%p189_p2) }
   0xd   : > { %s1347_s20 = smov (!%p217_p3, %s781_s20), 15  ;;  %861 = vmatpush1.bf16.msra.mxu0 %v860_v35  ;;  %898 = vmatprep.subr.bf16.mxu1 %v866_v48  ;;  %v1145_v58 = vpack.c.bf16 %v570_v55, %v569_v54  ;;  %v1147_v59 = vpack.c.bf16 %v588_v57, %v587_v56  ;;  %v571_v60 = vld [vmem:[%s1343_s3 + $0x20] sm:$0xff]  ;;  %v572_v61 = vld [vmem:[%s1343_s3 + $0x28] sm:$0xff]  ;;  %v589_v62 = vld [vmem:[%s1343_s3 + $0xb0] sm:$0xff] }
   0xe   : > { %s782_s21 = sshll.u32 %s1347_s20, 3  ;;  %863 = vmatprep.subr.bf16.mxu0 %v862_v38  ;;  %906 = vmatpush3.bf16.msra.mxu1 %v1127_v52  ;;  %v590_v63 = vld [vmem:[%s1343_s3 + $0xb8] sm:$0xff]  ;;  %v595_v24 = vld [vmem:[%s1343_s3 + $0xe0] sm:$0xff]  ;;  %v596_v25 = vld [vmem:[%s1343_s3 + $0xe8] sm:$0xff] }
   0xf   : > { %s220_s24 = scalar_lea.vmem %s1340_s0, %s782_s21  ;;  %899 = vmatprep.subr.bf16.mxu1 %v1129_v53  ;;  %v1219_v27 = vpack.c.bf16 %v596_v25, %v595_v24  ;;  %s1319_s10 = scalar_lea.vmem %s1345_s5, %s782_s21 }
  0x10   : > { %v1026_v0 = vld [vmem:[%s220_s24 + $0x10] sm:$0xff]  ;;  %v1028_v1 = vld [vmem:[%s220_s24] sm:$0xff]  ;;  %v1030_v2 = vld [vmem:[%s220_s24 + $0x18] sm:$0xff] }
  0x11   : > { %v238_v3 = vmul.f32 %v1026_v0, %v1026_v0  ;;  %v236_v4 = vmul.f32 %v1028_v1, %v1028_v1  ;;  %v239_v5 = vmul.f32 %v1030_v2, %v1030_v2  ;;  %v1038_v6 = vld [vmem:[%s220_s24 + $0x8] sm:$0xff]  ;;  %v1044_v9 = vld [vmem:[%s220_s24 + $0x20] sm:$0xff]  ;;  %v1054_v16 = vld [vmem:[%s220_s24 + $0x38] sm:$0xff]  ;;  %865 = vmatpush1.bf16.msra.mxu0 %v864_v41 }
  0x12   : > { %v237_v7 = vmul.f32 %v1038_v6, %v1038_v6  ;;  %v1042_v8 = vld [vmem:[%s220_s24 + $0x28] sm:$0xff]  ;;  %v240_v15 = vmul.f32 %v1044_v9, %v1044_v9  ;;  %v1056_v17 = vld [vmem:[%s220_s24 + $0x30] sm:$0xff]  ;;  %v243_v20 = vmul.f32 %v1054_v16, %v1054_v16  ;;  %785 = vmatprep.subr.msk.mxu0 %vm431_vm1, %v394_v42  ;;  %907 = vmatpush3.bf16.msra.mxu1 %v1145_v58 }
  0x13   : > { %v251_v10 = vsel %vm244_vm0, %v238_v3, 0.0  ;;  %v245_v11 = vsel %vm244_vm0, %v236_v4, 0.0  ;;  %v254_v12 = vsel %vm244_vm0, %v239_v5, 0.0  ;;  %v241_v14 = vmul.f32 %v1042_v8, %v1042_v8  ;;  %900 = vmatprep.subr.bf16.mxu1 %v1147_v59  ;;  %v573_v5 = vld [vmem:[%s1343_s3 + $0x30] sm:$0xff] }
  0x14   : > { %252 = vadd.xlane.f32.xlu1 %v251_v10  ;;  %246 = vadd.xlane.f32.xlu0 %v245_v11  ;;  %v248_v13 = vsel %vm244_vm0, %v237_v7, 0.0  ;;  %v257_v19 = vsel %vm244_vm0, %v240_v15, 0.0  ;;  %v242_v21 = vmul.f32 %v1056_v17, %v1056_v17  ;;  %v266_v22 = vsel %vm244_vm0, %v243_v20, 0.0  ;;  %v574_v7 = vld [vmem:[%s1343_s3 + $0x38] sm:$0xff]  ;;  %v591_v10 = vld [vmem:[%s1343_s3 + $0xc0] sm:$0xff]  ;;  %v592_v11 = vld [vmem:[%s1343_s3 + $0xc8] sm:$0xff] }
  0x15   : > { %v260_v18 = vsel %vm244_vm0, %v241_v14, 0.0  ;;  %786 = vmatpush1.msk.msra.mxu0 %vm431_vm1, %v393_v43  ;;  %v1163_v3 = vpack.c.bf16 %v572_v61, %v571_v60  ;;  %v1165_v4 = vpack.c.bf16 %v590_v63, %v589_v62  ;;  %v575_v14 = vld [vmem:[%s1343_s3 + $0x40] sm:$0xff]  ;;  %v576_v15 = vld [vmem:[%s1343_s3 + $0x48] sm:$0xff] }
  0x16   : > { %v263_v23 = vsel %vm244_vm0, %v242_v21, 0.0  ;;  %867 = vmatprep.subr.bf16.mxu0 %v866_v48  ;;  %v1199_v20 = vpack.c.bf16 %v576_v15, %v575_v14 }
  0x17   : > { %908 = vmatpush3.bf16.msra.mxu1 %v1163_v3 }
  0x18   : > { %255 = vadd.xlane.f32.xlu1 %v254_v12  ;;  %249 = vadd.xlane.f32.xlu0 %v248_v13  ;;  %v1181_v12 = vpack.c.bf16 %v574_v7, %v573_v5  ;;  %v1183_v13 = vpack.c.bf16 %v592_v11, %v591_v10 }
  0x19   : > { %901 = vmatprep.subr.bf16.mxu1 %v1165_v4 }
  0x1b   : > { %909 = vmatpush3.bf16.msra.mxu1 %v1181_v12 }
  0x1c   : > { %261 = vadd.xlane.f32.xlu1 %v260_v18  ;;  %258 = vadd.xlane.f32.xlu0 %v257_v19  ;;  %v593_v18 = vld [vmem:[%s1343_s3 + $0xd0] sm:$0xff]  ;;  %v594_v19 = vld [vmem:[%s1343_s3 + $0xd8] sm:$0xff] }
  0x1d   : > { %902 = vmatprep.subr.bf16.mxu1 %v1183_v13  ;;  %v1201_v21 = vpack.c.bf16 %v594_v19, %v593_v18 }
  0x1f   : > { %910 = vmatpush3.bf16.msra.mxu1 %v1199_v20 }
  0x20   : > { %267 = vadd.xlane.f32.xlu1 %v266_v22  ;;  %264 = vadd.xlane.f32.xlu0 %v263_v23  ;;  %v577_v22 = vld [vmem:[%s1343_s3 + $0x50] sm:$0xff]  ;;  %v578_v23 = vld [vmem:[%s1343_s3 + $0x58] sm:$0xff] }
  0x21   : > { %903 = vmatprep.subr.bf16.mxu1 %v1201_v21  ;;  %v1217_v26 = vpack.c.bf16 %v578_v23, %v577_v22 }
  0x23   : > { %911 = vmatpush3.bf16.msra.mxu1 %v1217_v26 }
  0x24   : > { %904 = vmatprep.subr.bf16.mxu1 %v1219_v27 }
  0xa1   : > { %v253_v28 = vpop.xlane.xlu1 %252  ;;  %v247_v29 = vpop.xlane.xlu0 %246 }
  0xa2   : > { %v271_v30 = vmax.f32 %v253_v28, 1e-15  ;;  %v269_v31 = vmax.f32 %v247_v29, 1e-15 }
  0xa4   : > { %923 = vrsqrt.f32 %v271_v30 }
  0xa5   : > { %925 = vrsqrt.f32 %v269_v31  ;;  %v256_v32 = vpop.xlane.xlu1 %255  ;;  %v250_v33 = vpop.xlane.xlu0 %249 }
  0xa6   : > { %v272_v34 = vmax.f32 %v256_v32, 1e-15  ;;  %v270_v35 = vmax.f32 %v250_v33, 1e-15 }
  0xa8   : > { %927 = vrsqrt.f32 %v272_v34 }
  0xa9   : > { %929 = vrsqrt.f32 %v270_v35  ;;  %v262_v36 = vpop.xlane.xlu1 %261  ;;  %v259_v37 = vpop.xlane.xlu0 %258 }
  0xaa   : > { %v274_v38 = vmax.f32 %v262_v36, 1e-15  ;;  %v273_v39 = vmax.f32 %v259_v37, 1e-15 }
  0xac   : > { %931 = vrsqrt.f32 %v274_v38 }
  0xad   : > { %933 = vrsqrt.f32 %v273_v39  ;;  %v268_v40 = vpop.xlane.xlu1 %267  ;;  %v265_v41 = vpop.xlane.xlu0 %264 }
  0xae   : > { %v1223_v42 = vpop.eup %923  ;;  %v276_v43 = vmax.f32 %v268_v40, 1e-15  ;;  %v275_v45 = vmax.f32 %v265_v41, 1e-15 }
  0xaf   : > { %v1225_v46 = vpop.eup %925  ;;  %v287_v47 = vmul.f32 %v1223_v42, %v253_v28 }
  0xb0   : > { %v285_v48 = vmul.f32 %v1225_v46, %v247_v29  ;;  %935 = vrsqrt.f32 %v276_v43 }
  0xb1   : > { %v295_v49 = vmin.f32 %v287_v47, 0.99999  ;;  %937 = vrsqrt.f32 %v275_v45 }
  0xb2   : > { %v1229_v50 = vpop.eup %927  ;;  %v293_v51 = vmin.f32 %v285_v48, 0.99999 }
  0xb3   : > { %v1231_v54 = vpop.eup %929  ;;  %v303_v55 = vadd.f32 1.0, %v295_v49  ;;  %v327_v56 = vsub.f32 1.0, %v295_v49  ;;  %v288_v57 = vmul.f32 %v1229_v50, %v256_v32 }
  0xb4   : > { %v301_v60 = vadd.f32 1.0, %v293_v51  ;;  %v325_v61 = vsub.f32 1.0, %v293_v51  ;;  %v286_v62 = vmul.f32 %v1231_v54, %v250_v33 }
  0xb5   : > { %939 = vlog2.f32 %v303_v55  ;;  %v296_v63 = vmin.f32 %v288_v57, 0.99999 }
  0xb6   : > { %v1235_v5 = vpop.eup %931  ;;  %941 = vlog2.f32 %v327_v56  ;;  %v294_v7 = vmin.f32 %v286_v62, 0.99999 }
  0xb7   : > { %v1237_v10 = vpop.eup %933  ;;  %943 = vlog2.f32 %v301_v60  ;;  %v304_v11 = vadd.f32 1.0, %v296_v63  ;;  %v328_v14 = vsub.f32 1.0, %v296_v63  ;;  %v290_v15 = vmul.f32 %v1235_v5, %v262_v36 }
  0xb8   : > { %945 = vlog2.f32 %v325_v61  ;;  %v302_v18 = vadd.f32 1.0, %v294_v7  ;;  %v326_v19 = vsub.f32 1.0, %v294_v7  ;;  %v289_v22 = vmul.f32 %v1237_v10, %v259_v37 }
  0xb9   : > { %947 = vlog2.f32 %v304_v11  ;;  %v298_v23 = vmin.f32 %v290_v15, 0.99999 }
  0xba   : > { %v1241_v24 = vpop.eup %935  ;;  %949 = vlog2.f32 %v328_v14  ;;  %v297_v25 = vmin.f32 %v289_v22, 0.99999 }
  0xbb   : > { %v1243_v28 = vpop.eup %937  ;;  %951 = vlog2.f32 %v302_v18  ;;  %v306_v29 = vadd.f32 1.0, %v298_v23  ;;  %v292_v30 = vmul.f32 %v1241_v24, %v268_v40  ;;  %v330_v34 = vsub.f32 1.0, %v298_v23 }
  0xbc   : > { %953 = vlog2.f32 %v326_v19  ;;  %v305_v31 = vadd.f32 1.0, %v297_v25  ;;  %v329_v32 = vsub.f32 1.0, %v297_v25  ;;  %v291_v33 = vmul.f32 %v1243_v28, %v265_v41 }
  0xbd   : > { %955 = vlog2.f32 %v306_v29  ;;  %v300_v38 = vmin.f32 %v292_v30, 0.99999 }
  0xbe   : > { %v299_v35 = vmin.f32 %v291_v33, 0.99999  ;;  %957 = vlog2.f32 %v305_v31 }
  0xbf   : > { %v940_v36 = vpop.eup %939  ;;  %959 = vlog2.f32 %v329_v32  ;;  %v308_v41 = vadd.f32 1.0, %v300_v38  ;;  %v332_v62 = vsub.f32 1.0, %v300_v38 }
  0xc0   : > { %v942_v37 = vpop.eup %941  ;;  %v314_v43 = vmul.f32 0.6931472, %v940_v36  ;;  %961 = vlog2.f32 %v330_v34  ;;  %v307_v47 = vadd.f32 1.0, %v299_v35  ;;  %v331_v49 = vsub.f32 1.0, %v299_v35 }
  0xc1   : > { %v944_v39 = vpop.eup %943  ;;  %v338_v45 = vmul.f32 0.6931472, %v942_v37 }
  0xc2   : > { %v946_v48 = vpop.eup %945  ;;  %v310_v40 = vmul.f32 0.6931472, %v944_v39  ;;  %963 = vlog2.f32 %v307_v47 }
  0xc3   : > { %v948_v51 = vpop.eup %947  ;;  %v334_v55 = vmul.f32 0.6931472, %v946_v48  ;;  %v351_v60 = vsub.f32 %v314_v43, %v338_v45  ;;  %965 = vlog2.f32 %v331_v49 }
  0xc4   : > { %v950_v56 = vpop.eup %949  ;;  %v316_v7 = vmul.f32 0.6931472, %v948_v51  ;;  %967 = vlog2.f32 %v308_v41 }
  0xc5   : > { %v952_v57 = vpop.eup %951  ;;  %v349_v61 = vsub.f32 %v310_v40, %v334_v55  ;;  %v340_v11 = vmul.f32 0.6931472, %v950_v56  ;;  %v359_v30 = vmul.f32 0.5, %v351_v60  ;;  %969 = vlog2.f32 %v332_v62  ;;  %v395_v62 = vld [vmem:[%s1342_s2] sm:$0x3] }
  0xc6   : > { %v954_v63 = vpop.eup %953  ;;  %v312_v14 = vmul.f32 0.6931472, %v952_v57 }
  0xc7   : > { %v357_v15 = vmul.f32 0.5, %v349_v61  ;;  %v336_v18 = vmul.f32 0.6931472, %v954_v63  ;;  %v956_v19 = vpop.eup %955  ;;  %v352_v31 = vsub.f32 %v316_v7, %v340_v11 }
  0xc8   : > { %v958_v22 = vpop.eup %957  ;;  %v320_v38 = vmul.f32 0.6931472, %v956_v19 }
  0xc9   : > { %v350_v23 = vsub.f32 %v312_v14, %v336_v18  ;;  %v365_v25 = vmul.f32 %v1225_v46, %v357_v15  ;;  %v960_v29 = vpop.eup %959  ;;  %v318_v34 = vmul.f32 0.6931472, %v958_v22  ;;  %v367_v46 = vmul.f32 %v1223_v42, %v359_v30 }
  0xca   : > { %v962_v32 = vpop.eup %961  ;;  %v342_v35 = vmul.f32 0.6931472, %v960_v29  ;;  %v360_v45 = vmul.f32 0.5, %v352_v31 }
  0xcb   : > { %v358_v33 = vmul.f32 0.5, %v350_v23  ;;  %v373_v36 = vmul.f32 %v365_v25, %v1028_v1  ;;  %v344_v39 = vmul.f32 0.6931472, %v962_v32 }
  0xcc   : > { %v964_v43 = vpop.eup %963  ;;  %v353_v47 = vsub.f32 %v318_v34, %v342_v35  ;;  %v368_v55 = vmul.f32 %v1229_v50, %v360_v45 }
  0xcd   : > { %787 = vmatmul.mubr.msk.f32.vlgmr.msra.gmra.mrb[0].mxu0 %vm244_vm0, %v373_v36  ;;  %v366_v37 = vmul.f32 %v1231_v54, %v358_v33  ;;  %v966_v1 = vpop.eup %965  ;;  %v354_v40 = vsub.f32 %v320_v38, %v344_v39  ;;  %v375_v54 = vmul.f32 %v367_v46, %v1026_v0 }
  0xce   : > { %508 = vmatprep.mubr.f32.mxu0 %v979_v44  ;;  %869 = vmatpush3.bf16.msra.mxu0 %v1127_v52  ;;  %v968_v42 = vpop.eup %967  ;;  %v361_v49 = vmul.f32 0.5, %v353_v47  ;;  %v322_v52 = vmul.f32 0.6931472, %v964_v43  ;;  %v346_v51 = vmul.f32 0.6931472, %v966_v1 }
  0xcf   : > { %v374_v48 = vmul.f32 %v366_v37, %v1038_v6  ;;  %871 = vmatprep.subr.bf16.mxu0 %v1129_v53  ;;  %v970_v6 = vpop.eup %969  ;;  %v362_v53 = vmul.f32 0.5, %v354_v40  ;;  %v324_v56 = vmul.f32 0.6931472, %v968_v42 }
  0xd0   : > { %v348_v0 = vmul.f32 0.6931472, %v970_v6  ;;  %v355_v41 = vsub.f32 %v322_v52, %v346_v51  ;;  %v369_v57 = vmul.f32 %v1237_v10, %v361_v49 }
  0xd1   : > { %788 = vmatmul.mubr.msk.f32.gmra.mrb[2].mxu0 %vm244_vm0, %v374_v48 }
  0xd2   : > { %514 = vmatprep.mubr.f32.mxu0 %v979_v44  ;;  %873 = vmatpush3.bf16.msra.mxu0 %v1145_v58  ;;  %v376_v58 = vmul.f32 %v368_v55, %v1030_v2  ;;  %v363_v50 = vmul.f32 0.5, %v355_v41  ;;  %v377_v60 = vmul.f32 %v369_v57, %v1044_v9 }
  0xd3   : > { %875 = vmatprep.subr.bf16.mxu0 %v1147_v59  ;;  %v356_v59 = vsub.f32 %v324_v56, %v348_v0 }
  0xd4   : > { %v371_v10 = vmul.f32 %v1243_v28, %v363_v50 }
  0xd5   : > { %789 = vmatmul.mubr.msk.f32.gmra.mrb[4].mxu0 %vm244_vm0, %v375_v54  ;;  %v364_v2 = vmul.f32 0.5, %v356_v59 }
  0xd6   : > { %520 = vmatprep.mubr.f32.mxu0 %v979_v44  ;;  %877 = vmatpush3.bf16.msra.mxu0 %v1163_v3  ;;  %v370_v3 = vmul.f32 %v1235_v5, %v362_v53  ;;  %v379_v9 = vmul.f32 %v371_v10, %v1056_v17  ;;  %v580_v17 = vld [vmem:[%s1343_s3 + $0x68] sm:$0xff] }
  0xd7   : > { %879 = vmatprep.subr.bf16.mxu0 %v1165_v4 }
  0xd8   : > { %v378_v4 = vmul.f32 %v370_v3, %v1042_v8 }
  0xd9   : > { %790 = vmatmul.mubr.msk.f32.gmra.mrb[6].mxu0 %vm244_vm0, %v376_v58 }
  0xda   : > { %526 = vmatprep.mubr.f32.mxu0 %v979_v44  ;;  %881 = vmatpush3.bf16.msra.mxu0 %v1181_v12  ;;  %v372_v12 = vmul.f32 %v1241_v24, %v364_v2  ;;  %v397_v24 = vlaneseq }
  0xdb   : > { %883 = vmatprep.subr.bf16.mxu0 %v1183_v13  ;;  %v579_v13 = vld [vmem:[%s1343_s3 + $0x60] sm:$0xff] }
  0xdc   : > { %v380_v8 = vmul.f32 %v372_v12, %v1054_v16  ;;  %v598_v16 = vld [vmem:[%s1343_s3 + $0xf8] sm:$0xff]  ;;  %v398_v28 = vshrl.u32 %v397_v24, 7 }
  0xdd   : > { %791 = vmatmul.mubr.msk.f32.gmra.mrb[8].mxu0 %vm244_vm0, %v377_v60 }
  0xde   : > { %532 = vmatprep.mubr.f32.mxu0 %v979_v44  ;;  %885 = vmatpush3.bf16.msra.mxu0 %v1199_v20  ;;  %v892_v20 = vpack.c.bf16 %v580_v17, %v579_v13  ;;  %v399_v61 = vsub.s32 0, %v398_v28  ;;  %v403_v63 = vsub.s32 1, %v398_v28  ;;  %v795_v17 = vld [vmem:[%s1344_s4] ss:$0 sm:$0xff] }
  0xdf   : > { %887 = vmatprep.subr.bf16.mxu0 %v1201_v21  ;;  %v597_v21 = vld [vmem:[%s1343_s3 + $0xf0] sm:$0xff] }
  0xe0   : > { %912 = vmatpush3.bf16.msra.mxu1 %v892_v20  ;;  %v400_v7 = vrot.slane %v395_v62, %v399_v61  ;;  %v404_v11 = vrot.slane %v395_v62, %v403_v63 }
  0xe1   : > { %792 = vmatmul.mubr.msk.f32.gmra.mrb[10].mxu0 %vm244_vm0, %v378_v4 }
  0xe2   : > { %538 = vmatprep.mubr.f32.mxu0 %v979_v44  ;;  %889 = vmatpush3.bf16.msra.mxu0 %v1217_v26  ;;  %v581_v26 = vld [vmem:[%s1343_s3 + $0x70] sm:$0xff] }
  0xe3   : > { %891 = vmatprep.subr.bf16.mxu0 %v1219_v27  ;;  %v582_v27 = vld [vmem:[%s1343_s3 + $0x78] sm:$0xff] }
  0xe4   : > { %v896_v5 = vpack.c.bf16 %v582_v27, %v581_v26 }
  0xe5   : > { %793 = vmatmul.mubr.msk.f32.gmra.mrb[12].mxu0 %vm244_vm0, %v379_v9 }
  0xe6   : > { %544 = vmatprep.mubr.f32.mxu0 %v979_v44  ;;  %893 = vmatpush3.bf16.msra.mxu0 %v892_v20  ;;  %v894_v44 = vpack.c.bf16 %v598_v16, %v597_v21 }
  0xe8   : > { %895 = vmatprep.subr.bf16.mxu0 %v894_v44  ;;  %905 = vmatprep.subr.bf16.mxu1 %v894_v44 }
  0xe9   : > { %794 = vmatmul.mubr.msk.f32.gmra.mrb[14].mxu0 %vm244_vm0, %v380_v8  ;;  %913 = vmatpush3.bf16.msra.mxu1 %v896_v5 }
  0xea   : > { %897 = vmatpush3.bf16.msra.mxu0 %v896_v5 }
 0x1a0   : > { %v504_v14 = vpop.f32.mrb[0].mxu0 }
 0x1a1   : > { %v505_v15 = vadd.f32 %v504_v14, %v400_v7  ;;  %v506_v18 = vpop.f32.mrb[1].mxu0 }
 0x1a2   : > { %v507_v19 = vadd.f32 %v506_v18, %v404_v11 }
 0x1a3   : > { %v551_v25 = vmax.f32 %v505_v15, 0.0 }
 0x1a4   : > { %v552_v22 = vmax.f32 %v507_v19, 0.0  ;;  %v510_v23 = vpop.f32.mrb[2].mxu0 }
 0x1a5   : > { %v511_v29 = vadd.f32 %v510_v23, %v400_v7  ;;  %v512_v30 = vpop.f32.mrb[3].mxu0 }
 0x1a6   : > { %v513_v31 = vadd.f32 %v512_v30, %v404_v11  ;;  %670 = vmatprep.mubr.f32.mxu0 %v552_v22 }
 0x1a7   : > { %671 = vmatmul.mubr.f32.vlgmr.msra.gmra.mrb[16].mxu0 %v551_v25  ;;  %v553_v34 = vmax.f32 %v511_v29, 0.0 }
 0x1a8   : > { %v554_v32 = vmax.f32 %v513_v31, 0.0  ;;  %v516_v33 = vpop.f32.mrb[4].mxu0 }
 0x1a9   : > { %v517_v35 = vadd.f32 %v516_v33, %v400_v7  ;;  %v518_v36 = vpop.f32.mrb[5].mxu0 }
 0x1aa   : > { %675 = vmatprep.mubr.f32.mxu0 %v554_v32  ;;  %v519_v37 = vadd.f32 %v518_v36, %v404_v11 }
 0x1ab   : > { %676 = vmatmul.mubr.f32.gmra.mrb[18].mxu0 %v553_v34  ;;  %v555_v46 = vmax.f32 %v517_v35, 0.0 }
 0x1ac   : > { %v522_v38 = vpop.f32.mrb[6].mxu0  ;;  %v556_v39 = vmax.f32 %v519_v37, 0.0 }
 0x1ad   : > { %v523_v43 = vadd.f32 %v522_v38, %v400_v7  ;;  %v524_v45 = vpop.f32.mrb[7].mxu0 }
 0x1ae   : > { %v525_v47 = vadd.f32 %v524_v45, %v404_v11  ;;  %680 = vmatprep.mubr.f32.mxu1 %v556_v39 }
 0x1af   : > { %681 = vmatmul.mubr.f32.vlgmr.msra.gmra.mrb[0].mxu1 %v555_v46  ;;  %v557_v40 = vmax.f32 %v523_v43, 0.0 }
 0x1b0   : > { %v558_v48 = vmax.f32 %v525_v47, 0.0  ;;  %v528_v1 = vpop.f32.mrb[8].mxu0 }
 0x1b1   : > { %v529_v54 = vadd.f32 %v528_v1, %v400_v7  ;;  %v530_v42 = vpop.f32.mrb[9].mxu0 }
 0x1b2   : > { %v531_v49 = vadd.f32 %v530_v42, %v404_v11  ;;  %685 = vmatprep.mubr.f32.mxu1 %v558_v48 }
 0x1b3   : > { %686 = vmatmul.mubr.f32.gmra.mrb[2].mxu1 %v557_v40  ;;  %v559_v55 = vmax.f32 %v529_v54, 0.0 }
 0x1b4   : > { %v560_v52 = vmax.f32 %v531_v49, 0.0  ;;  %v534_v51 = vpop.f32.mrb[10].mxu0 }
 0x1b5   : > { %v535_v6 = vadd.f32 %v534_v51, %v400_v7  ;;  %v536_v53 = vpop.f32.mrb[11].mxu0 }
 0x1b6   : > { %v537_v56 = vadd.f32 %v536_v53, %v404_v11  ;;  %690 = vmatprep.mubr.f32.mxu1 %v560_v52 }
 0x1b7   : > { %691 = vmatmul.mubr.f32.gmra.mrb[4].mxu1 %v559_v55  ;;  %v561_v58 = vmax.f32 %v535_v6, 0.0 }
 0x1b8   : > { %v562_v0 = vmax.f32 %v537_v56, 0.0  ;;  %v540_v41 = vpop.f32.mrb[12].mxu0 }
 0x1b9   : > { %v541_v57 = vadd.f32 %v540_v41, %v400_v7  ;;  %v542_v59 = vpop.f32.mrb[13].mxu0 }
 0x1ba   : > { %v543_v50 = vadd.f32 %v542_v59, %v404_v11  ;;  %695 = vmatprep.mubr.f32.mxu1 %v562_v0 }
 0x1bb   : > { %696 = vmatmul.mubr.f32.gmra.mrb[6].mxu1 %v561_v58  ;;  %v563_v2 = vmax.f32 %v541_v57, 0.0 }
 0x1bc   : > { %v564_v60 = vmax.f32 %v543_v50, 0.0  ;;  %v546_v3 = vpop.f32.mrb[14].mxu0 }
 0x1bd   : > { %v547_v4 = vadd.f32 %v546_v3, %v400_v7  ;;  %v548_v10 = vpop.f32.mrb[15].mxu0 }
 0x1be   : > { %v549_v9 = vadd.f32 %v548_v10, %v404_v11  ;;  %700 = vmatprep.mubr.f32.mxu1 %v564_v60 }
 0x1bf   : > { %701 = vmatmul.mubr.f32.gmra.mrb[8].mxu1 %v563_v2  ;;  %v565_v8 = vmax.f32 %v547_v4, 0.0 }
 0x1c0   : > { %v566_v12 = vmax.f32 %v549_v9, 0.0 }
 0x1c2   : > { %705 = vmatprep.mubr.f32.mxu1 %v566_v12 }
 0x1c3   : > { %706 = vmatmul.mubr.f32.gmra.mrb[10].mxu1 %v565_v8 }
 0x27a   : > { %v830_v13 = vpop.f32.mrb[16].mxu0 }
 0x27b   : > { %v831_v20 = vpop.f32.mrb[17].mxu0 }
 0x27c   : > { %v832_v21 = vadd.f32 %v831_v20, %v830_v13 }
 0x27e   : > { %v673_v16 = vadd.f32 %v832_v21, %v795_v17  ;;  %v833_v44 = vpop.f32.mrb[18].mxu0 }
 0x27f   : > { %v834_v26 = vpop.f32.mrb[19].mxu0 }
 0x280   : > { %712 = vst.msk [vmem:[%s1319_s10] sm:$0xff] %vm711_vm2, %v673_v16  ;;  %v835_v27 = vadd.f32 %v834_v26, %v833_v44 }
 0x282   : > { %v678_v5 = vadd.f32 %v835_v27, %v795_v17  ;;  %v836_v24 = vpop.f32.mrb[0].mxu1 }
 0x283   : > { %v837_v28 = vpop.f32.mrb[1].mxu1 }
 0x284   : > { %713 = vst.msk [vmem:[%s1319_s10 + $0x8] sm:$0xff] %vm711_vm2, %v678_v5  ;;  %v838_v61 = vadd.f32 %v837_v28, %v836_v24 }
 0x286   : > { %v683_v62 = vadd.f32 %v838_v61, %v795_v17  ;;  %v839_v63 = vpop.f32.mrb[2].mxu1 }
 0x287   : > { %v840_v7 = vpop.f32.mrb[3].mxu1 }
 0x288   : > { %714 = vst.msk [vmem:[%s1319_s10 + $0x10] sm:$0xff] %vm711_vm2, %v683_v62  ;;  %v841_v11 = vadd.f32 %v840_v7, %v839_v63 }
 0x28a   : > { %v688_v14 = vadd.f32 %v841_v11, %v795_v17  ;;  %v842_v15 = vpop.f32.mrb[4].mxu1 }
 0x28b   : > { %v843_v18 = vpop.f32.mrb[5].mxu1 }
 0x28c   : > { %715 = vst.msk [vmem:[%s1319_s10 + $0x18] sm:$0xff] %vm711_vm2, %v688_v14  ;;  %v844_v19 = vadd.f32 %v843_v18, %v842_v15 }
 0x28e   : > { %v693_v22 = vadd.f32 %v844_v19, %v795_v17  ;;  %v845_v23 = vpop.f32.mrb[6].mxu1 }
 0x28f   : > { %v846_v25 = vpop.f32.mrb[7].mxu1 }
 0x290   : > { %716 = vst.msk [vmem:[%s1319_s10 + $0x20] sm:$0xff] %vm711_vm2, %v693_v22  ;;  %v847_v29 = vadd.f32 %v846_v25, %v845_v23 }
 0x292   : > { %v698_v30 = vadd.f32 %v847_v29, %v795_v17  ;;  %v848_v31 = vpop.f32.mrb[8].mxu1 }
 0x293   : > { %v849_v32 = vpop.f32.mrb[9].mxu1 }
 0x294   : > { %717 = vst.msk [vmem:[%s1319_s10 + $0x28] sm:$0xff] %vm711_vm2, %v698_v30  ;;  %v850_v33 = vadd.f32 %v849_v32, %v848_v31 }
 0x296   : > { %v703_v34 = vadd.f32 %v850_v33, %v795_v17  ;;  %v851_v35 = vpop.f32.mrb[10].mxu1 }
 0x297   : > { %v852_v36 = vpop.f32.mrb[11].mxu1 }
 0x298   : > { %718 = vst.msk [vmem:[%s1319_s10 + $0x30] sm:$0xff] %vm711_vm2, %v703_v34  ;;  %v853_v37 = vadd.f32 %v852_v36, %v851_v35 }
 0x29a   : > { %v708_v38 = vadd.f32 %v853_v37, %v795_v17 }
 0x29c   : > { %719 = vst.msk [vmem:[%s1319_s10 + $0x38] sm:$0xff] %vm711_vm2, %v708_v38 }
 0x29d PF: > { %s15_s18 = sadd.s32 1, %s977_s18  }
 0x29e   : > { %p12_p4 = scmp.ge.s32.totalorder %s15_s18, 4  }
 0x2a0   :  { %14 = sbr.rel (!%p12_p4) target bundleno = 1 (0x1), region = 70 }

</bundles_post_ra>
